<compile_context>
chip_gen: v7x
topology: tpu7x:2x2x1
jax: 0.10.0
libtpu: 0.0.40
codegen_flags: <defaults>
</compile_context>

<pallas_src>
import functools

import jax
import jax.numpy as jnp
import numpy as np
from jax import lax
from jax.experimental import pallas as pl
from jax.experimental.pallas import tpu as pltpu


def _pick_tile(n, cap=256):
    """Largest tile <= cap that divides n exactly; falls back to n (no padding
    so kv tiles never contain garbage rows)."""
    if n <= cap:
        return n
    for t in (cap, 128, 64, 32, 16, 8):
        if n % t == 0:
            return t
    return n


def _cross_attn_kernel(x_ref, oth_ref, wq_ref, bq_ref, wk_ref, bk_ref,
                       wv_ref, bv_ref, wo_ref, bo_ref, out_ref,
                       m_sc, l_sc, acc_sc, *, nhead, dq, dk, dv):
    """One (batch, q-tile, kv-tile) step: packed projections + online softmax."""
    ki = pl.program_id(2)

    @pl.when(ki == 0)
    def _():
        m_sc[...] = jnp.full(m_sc.shape, -jnp.inf, m_sc.dtype)
        l_sc[...] = jnp.zeros(l_sc.shape, l_sc.dtype)
        acc_sc[...] = jnp.zeros(acc_sc.shape, acc_sc.dtype)

    x = x_ref[0]        # (TQ, I)
    oth = oth_ref[0]    # (TK, I*)

    # Lane-dense packed projections for all heads at once (MXU, f32 accumulate).
    # Wq/bq already carry the 1/sqrt(DK) scale (folded on the host).
    q = jnp.dot(x, wq_ref[...], preferred_element_type=jnp.float32) + bq_ref[...]   # (TQ, H*DQ)
    k = jnp.dot(oth, wk_ref[...], preferred_element_type=jnp.float32) + bk_ref[...] # (TK, H*DK)
    v = jnp.dot(oth, wv_ref[...], preferred_element_type=jnp.float32) + bv_ref[...] # (TK, H*DV)

    # Per-head flash-style online softmax over the kv grid axis (static unroll;
    # nhead is small and known at trace time).
    for h in range(nhead):
        qh = q[:, h * dq:(h + 1) * dq]            # (TQ, DQ)
        kh = k[:, h * dk:(h + 1) * dk]            # (TK, DK)
        vh = v[:, h * dv:(h + 1) * dv]            # (TK, DV)

        # Contract on the feature axis directly: no explicit k.T / XLU transpose.
        s = lax.dot_general(qh, kh, (((1,), (1,)), ((), ())),
                            preferred_element_type=jnp.float32)      # (TQ, TK)

        m_prev = m_sc[:, h:h + 1]                                    # (TQ, 1)
        m_new = jnp.maximum(m_prev, jnp.max(s, axis=-1, keepdims=True))
        alpha = jnp.exp(m_prev - m_new)                              # (TQ, 1)
        p = jnp.exp(s - m_new)                                       # (TQ, TK)

        l_sc[:, h:h + 1] = alpha * l_sc[:, h:h + 1] + jnp.sum(
            p, axis=-1, keepdims=True)
        acc_sc[:, h * dv:(h + 1) * dv] = (
            alpha * acc_sc[:, h * dv:(h + 1) * dv]
            + jnp.dot(p, vh, preferred_element_type=jnp.float32))
        m_sc[:, h:h + 1] = m_new

    @pl.when(ki == pl.num_programs(2) - 1)
    def _():
        # Normalize each head in VMEM scratch, then one packed output matmul:
        #   concat(heads) @ Wo  ==  (TQ, H*DV) @ (H*DV, O), written once.
        for h in range(nhead):
            inv = pl.reciprocal(l_sc[:, h:h + 1], approx=True)       # EUP slot
            acc_sc[:, h * dv:(h + 1) * dv] = acc_sc[:, h * dv:(h + 1) * dv] * inv
        out = jnp.dot(acc_sc[...], wo_ref[...],
                      preferred_element_type=jnp.float32) + bo_ref[...]
        out_ref[0] = out.astype(out_ref.dtype)


def cross_attention(input_, other, params, *, q_tile=256, kv_tile=256):
    """input_: (B, S, I), other: (B, Sk, I*) -> (B, S, O)."""
    wq, bq = params["wq"], params["bq"]     # (H, I, DQ), (H, 1, DQ)
    wk, bk = params["wk"], params["bk"]     # (H, I*, DK), (H, 1, DK)
    wv, bv = params["wv"], params["bv"]     # (H, I*, DV), (H, 1, DV)
    wo, bo = params["wo"], params["bo"]     # (H, DV, O), (1, 1, O)

    B, S, I = input_.shape
    _, Sk, Io = other.shape
    H, _, DQ = wq.shape
    DK = wk.shape[-1]
    DV = wv.shape[-1]
    O = wo.shape[-1]

    scale = 1.0 / float(np.sqrt(DK))

    # Pack heads onto the lane (feature) axis -> lane-dense MXU matmuls.
    # Fold the 1/sqrt(DK) softmax scale into the (tiny, one-time) Wq/bq pack.
    wq_p = jnp.transpose(wq, (1, 0, 2)).reshape(I, H * DQ) * scale
    bq_p = bq.reshape(1, H * DQ) * scale
    wk_p = jnp.transpose(wk, (1, 0, 2)).reshape(Io, H * DK)
    bk_p = bk.reshape(1, H * DK)
    wv_p = jnp.transpose(wv, (1, 0, 2)).reshape(Io, H * DV)
    bv_p = bv.reshape(1, H * DV)
    wo_p = wo.reshape(H * DV, O)            # matches acc packing [h0 dv.., h1 dv..]
    bo_p = bo.reshape(1, O)

    TQ = _pick_tile(S, q_tile)
    TK = _pick_tile(Sk, kv_tile)
    nq = S // TQ
    nk = Sk // TK

    kernel = functools.partial(_cross_attn_kernel, nhead=H, dq=DQ, dk=DK, dv=DV)

    return pl.pallas_call(
        kernel,
        out_shape=jax.ShapeDtypeStruct((B, S, O), jnp.float32),
        grid_spec=pltpu.PrefetchScalarGridSpec(
            num_scalar_prefetch=0,
            grid=(B, nq, nk),
            in_specs=[
                pl.BlockSpec((1, TQ, I), lambda b, qi, ki: (b, qi, 0)),   # input_
                pl.BlockSpec((1, TK, Io), lambda b, qi, ki: (b, ki, 0)),  # other
                pl.BlockSpec((I, H * DQ), lambda b, qi, ki: (0, 0)),      # Wq packed (scaled)
                pl.BlockSpec((1, H * DQ), lambda b, qi, ki: (0, 0)),      # bq packed (scaled)
                pl.BlockSpec((Io, H * DK), lambda b, qi, ki: (0, 0)),     # Wk packed
                pl.BlockSpec((1, H * DK), lambda b, qi, ki: (0, 0)),      # bk packed
                pl.BlockSpec((Io, H * DV), lambda b, qi, ki: (0, 0)),     # Wv packed
                pl.BlockSpec((1, H * DV), lambda b, qi, ki: (0, 0)),      # bv packed
                pl.BlockSpec((H * DV, O), lambda b, qi, ki: (0, 0)),      # Wo packed
                pl.BlockSpec((1, O), lambda b, qi, ki: (0, 0)),           # bo
            ],
            out_specs=pl.BlockSpec((1, TQ, O), lambda b, qi, ki: (b, qi, 0)),
            scratch_shapes=[
                pltpu.VMEM((TQ, H), jnp.float32),       # running max per head
                pltpu.VMEM((TQ, H), jnp.float32),       # running sum per head
                pltpu.VMEM((TQ, H * DV), jnp.float32),  # running weighted V
            ],
        ),
        compiler_params=pltpu.CompilerParams(
            dimension_semantics=("parallel", "parallel", "arbitrary")),
    )(input_, other, wq_p, bq_p, wk_p, bk_p, wv_p, bv_p, wo_p, bo_p)


def cross_attention_ref(input_, other, params):
    """Pure-JAX reference matching the PyTorch module semantics."""
    wq, bq = params["wq"], params["bq"]
    wk, bk = params["wk"], params["bk"]
    wv, bv = params["wv"], params["bv"]
    wo, bo = params["wo"], params["bo"]
    H = wq.shape[0]
    DK = wk.shape[-1]

    head_results = []
    for h in range(H):
        q = input_ @ wq[h] + bq[h]
        k = other @ wk[h] + bk[h]
        v = other @ wv[h] + bv[h]
        s = (q @ jnp.swapaxes(k, -1, -2)) / jnp.sqrt(jnp.float32(DK))
        p = jax.nn.softmax(s, axis=-1)
        head_results.append(p @ v)
    concat = jnp.concatenate(head_results, axis=-1)           # (B, S, H*DV)
    wo_full = wo.reshape(-1, wo.shape[-1])                    # (H*DV, O)
    return concat @ wo_full + bo[0]                           # (B, S, O)


if __name__ == "__main__":
    # Small shapes consistent with the module's forward contract.
    B, S, Sk = 2, 8, 8
    I, Io = 16, 32          # input_ features, other features
    H = 2                   # nhead
    DQ = DK = 16
    DV = 16
    O = 16

    key = jax.random.PRNGKey(0)
    ks = jax.random.split(key, 12)
    scale = 0.1
    params = {
        "wq": scale * jax.random.normal(ks[0], (H, I, DQ), jnp.float32),
        "bq": scale * jax.random.normal(ks[1], (H, 1, DQ), jnp.float32),
        "wk": scale * jax.random.normal(ks[2], (H, Io, DK), jnp.float32),
        "bk": scale * jax.random.normal(ks[3], (H, 1, DK), jnp.float32),
        "wv": scale * jax.random.normal(ks[4], (H, Io, DV), jnp.float32),
        "bv": scale * jax.random.normal(ks[5], (H, 1, DV), jnp.float32),
        "wo": scale * jax.random.normal(ks[6], (H, DV, O), jnp.float32),
        "bo": scale * jax.random.normal(ks[7], (1, 1, O), jnp.float32),
    }

    input_ = jax.random.normal(ks[8], (B, S, I), jnp.float32)
    other = jax.random.normal(ks[9], (B, Sk, Io), jnp.float32)

    out = cross_attention(input_, other, params)
    out = jax.block_until_ready(out)

    ref = cross_attention_ref(input_, other, params)
    # Tolerance loosened slightly vs. exact softmax because the kernel uses the
    # EUP approximate reciprocal for the softmax normalization.
    np.testing.assert_allclose(np.asarray(out), np.asarray(ref),
                               rtol=5e-3, atol=5e-3)
    print("KERNEL_OK")
</pallas_src>

<mosaic_0001>
module attributes {stable_mosaic.version = 11 : i64} {
  func.func @_cross_attn_kernel(%arg0: i32, %arg1: i32, %arg2: i32, %arg3: memref<1x8x16xf32, #tpu.memory_space<vmem>>, %arg4: memref<1x8x32xf32, #tpu.memory_space<vmem>>, %arg5: memref<16x32xf32, #tpu.memory_space<vmem>>, %arg6: memref<1x32xf32, #tpu.memory_space<vmem>>, %arg7: memref<32x32xf32, #tpu.memory_space<vmem>>, %arg8: memref<1x32xf32, #tpu.memory_space<vmem>>, %arg9: memref<32x32xf32, #tpu.memory_space<vmem>>, %arg10: memref<1x32xf32, #tpu.memory_space<vmem>>, %arg11: memref<32x16xf32, #tpu.memory_space<vmem>>, %arg12: memref<1x16xf32, #tpu.memory_space<vmem>>, %arg13: memref<1x8x16xf32, #tpu.memory_space<vmem>>, %arg14: memref<8x2xf32, #tpu.memory_space<vmem>>, %arg15: memref<8x2xf32, #tpu.memory_space<vmem>>, %arg16: memref<8x32xf32, #tpu.memory_space<vmem>>) attributes {dimension_semantics = [#tpu.dimension_semantics<parallel>, #tpu.dimension_semantics<parallel>, #tpu.dimension_semantics<arbitrary>], iteration_bounds = array<i64: 2, 1, 1>, scalar_prefetch = 0 : i64, scratch_operands = 3 : i64, tpu.core_type = #tpu.core_type<tc>, window_params = [{transform_indices = @transform_0, window_bounds = array<i64: 1, 8, 16>}, {transform_indices = @transform_1, window_bounds = array<i64: 1, 8, 32>}, {pipeline_mode = #tpu.pipeline_mode<synchronous>, transform_indices = @transform_2, window_bounds = array<i64: 16, 32>}, {pipeline_mode = #tpu.pipeline_mode<synchronous>, transform_indices = @transform_3, window_bounds = array<i64: 1, 32>}, {pipeline_mode = #tpu.pipeline_mode<synchronous>, transform_indices = @transform_4, window_bounds = array<i64: 32, 32>}, {pipeline_mode = #tpu.pipeline_mode<synchronous>, transform_indices = @transform_5, window_bounds = array<i64: 1, 32>}, {pipeline_mode = #tpu.pipeline_mode<synchronous>, transform_indices = @transform_6, window_bounds = array<i64: 32, 32>}, {pipeline_mode = #tpu.pipeline_mode<synchronous>, transform_indices = @transform_7, window_bounds = array<i64: 1, 32>}, {pipeline_mode = #tpu.pipeline_mode<synchronous>, transform_indices = @transform_8, window_bounds = array<i64: 32, 16>}, {pipeline_mode = #tpu.pipeline_mode<synchronous>, transform_indices = @transform_9, window_bounds = array<i64: 1, 16>}, {transform_indices = @transform_10, window_bounds = array<i64: 1, 8, 16>}]} {
    %c0_i32 = arith.constant 0 : i32
    %0 = arith.cmpi eq, %arg2, %c0_i32 : i32
    %1 = arith.extui %0 : i1 to i32
    %c0_i32_0 = arith.constant 0 : i32
    %2 = arith.cmpi ne, %1, %c0_i32_0 : i32
    scf.if %2 {
      %cst_52 = arith.constant 0xFF800000 : f32
      %77 = vector.broadcast %cst_52 : f32 to vector<8x2xf32>
      %c0_53 = arith.constant 0 : index
      %c0_54 = arith.constant 0 : index
      %78 = vector.load %arg14[%c0_53, %c0_54] : memref<8x2xf32, #tpu.memory_space<vmem>>, vector<8x2xf32>
      tpu.vector_store %arg14[%c0_53, %c0_54], %77 {strides = array<i32>} : memref<8x2xf32, #tpu.memory_space<vmem>>, vector<8x2xf32>,
      %cst_55 = arith.constant 0.000000e+00 : f32
      %79 = vector.broadcast %cst_55 : f32 to vector<8x2xf32>
      %c0_56 = arith.constant 0 : index
      %c0_57 = arith.constant 0 : index
      %80 = vector.load %arg15[%c0_56, %c0_57] : memref<8x2xf32, #tpu.memory_space<vmem>>, vector<8x2xf32>
      tpu.vector_store %arg15[%c0_56, %c0_57], %79 {strides = array<i32>} : memref<8x2xf32, #tpu.memory_space<vmem>>, vector<8x2xf32>,
      %cst_58 = arith.constant 0.000000e+00 : f32
      %81 = vector.broadcast %cst_58 : f32 to vector<8x32xf32>
      %c0_59 = arith.constant 0 : index
      %c0_60 = arith.constant 0 : index
      %82 = vector.load %arg16[%c0_59, %c0_60] : memref<8x32xf32, #tpu.memory_space<vmem>>, vector<8x32xf32>
      tpu.vector_store %arg16[%c0_59, %c0_60], %81 {strides = array<i32>} : memref<8x32xf32, #tpu.memory_space<vmem>>, vector<8x32xf32>,
    } else {
    }
    %c0 = arith.constant 0 : index
    %c0_1 = arith.constant 0 : index
    %c0_2 = arith.constant 0 : index
    %3 = vector.load %arg3[%c0, %c0_1, %c0_2] : memref<1x8x16xf32, #tpu.memory_space<vmem>>, vector<1x8x16xf32>
    %4 = vector.shape_cast %3 : vector<1x8x16xf32> to vector<8x16xf32>
    %c0_3 = arith.constant 0 : index
    %c0_4 = arith.constant 0 : index
    %c0_5 = arith.constant 0 : index
    %5 = vector.load %arg4[%c0_3, %c0_4, %c0_5] : memref<1x8x32xf32, #tpu.memory_space<vmem>>, vector<1x8x32xf32>
    %6 = vector.shape_cast %5 : vector<1x8x32xf32> to vector<8x32xf32>
    %c0_6 = arith.constant 0 : index
    %c0_7 = arith.constant 0 : index
    %7 = vector.load %arg5[%c0_6, %c0_7] : memref<16x32xf32, #tpu.memory_space<vmem>>, vector<16x32xf32>
    %cst = arith.constant dense<0.000000e+00> : vector<8x32xf32>
    %8 = tpu.matmul %4, %7, %cst {dimension_numbers = #tpu.dot_dimension_numbers<[1], [0], [0], [1], [0, 0, 1, 1], [], []>} : vector<8x16xf32>, vector<16x32xf32>, vector<8x32xf32> -> vector<8x32xf32>
    %c0_8 = arith.constant 0 : index
    %c0_9 = arith.constant 0 : index
    %9 = vector.load %arg6[%c0_8, %c0_9] : memref<1x32xf32, #tpu.memory_space<vmem>>, vector<1x32xf32>
    %10 = vector.broadcast %9 : vector<1x32xf32> to vector<8x32xf32>
    %11 = arith.addf %8, %10 : vector<8x32xf32>
    %c0_10 = arith.constant 0 : index
    %c0_11 = arith.constant 0 : index
    %12 = vector.load %arg7[%c0_10, %c0_11] : memref<32x32xf32, #tpu.memory_space<vmem>>, vector<32x32xf32>
    %cst_12 = arith.constant dense<0.000000e+00> : vector<8x32xf32>
    %13 = tpu.matmul %6, %12, %cst_12 {dimension_numbers = #tpu.dot_dimension_numbers<[1], [0], [0], [1], [0, 0, 1, 1], [], []>} : vector<8x32xf32>, vector<32x32xf32>, vector<8x32xf32> -> vector<8x32xf32>
    %c0_13 = arith.constant 0 : index
    %c0_14 = arith.constant 0 : index
    %14 = vector.load %arg8[%c0_13, %c0_14] : memref<1x32xf32, #tpu.memory_space<vmem>>, vector<1x32xf32>
    %15 = vector.broadcast %14 : vector<1x32xf32> to vector<8x32xf32>
    %16 = arith.addf %13, %15 : vector<8x32xf32>
    %c0_15 = arith.constant 0 : index
    %c0_16 = arith.constant 0 : index
    %17 = vector.load %arg9[%c0_15, %c0_16] : memref<32x32xf32, #tpu.memory_space<vmem>>, vector<32x32xf32>
    %cst_17 = arith.constant dense<0.000000e+00> : vector<8x32xf32>
    %18 = tpu.matmul %6, %17, %cst_17 {dimension_numbers = #tpu.dot_dimension_numbers<[1], [0], [0], [1], [0, 0, 1, 1], [], []>} : vector<8x32xf32>, vector<32x32xf32>, vector<8x32xf32> -> vector<8x32xf32>
    %c0_18 = arith.constant 0 : index
    %c0_19 = arith.constant 0 : index
    %19 = vector.load %arg10[%c0_18, %c0_19] : memref<1x32xf32, #tpu.memory_space<vmem>>, vector<1x32xf32>
    %20 = vector.broadcast %19 : vector<1x32xf32> to vector<8x32xf32>
    %21 = arith.addf %18, %20 : vector<8x32xf32>
    %22 = vector.extract_strided_slice %11 {offsets = [0, 0], sizes = [8, 16], strides = [1, 1]} : vector<8x32xf32> to vector<8x16xf32>
    %23 = vector.extract_strided_slice %16 {offsets = [0, 0], sizes = [8, 16], strides = [1, 1]} : vector<8x32xf32> to vector<8x16xf32>
    %24 = vector.extract_strided_slice %21 {offsets = [0, 0], sizes = [8, 16], strides = [1, 1]} : vector<8x32xf32> to vector<8x16xf32>
    %cst_20 = arith.constant dense<0.000000e+00> : vector<8x8xf32>
    %25 = tpu.matmul %22, %23, %cst_20 {dimension_numbers = #tpu.dot_dimension_numbers<[1], [1], [0], [0], [0, 0, 1, 0], [], []>} : vector<8x16xf32>, vector<8x16xf32>, vector<8x8xf32> -> vector<8x8xf32>
    %c0_21 = arith.constant 0 : index
    %c0_22 = arith.constant 0 : index
    %26 = vector.load %arg14[%c0_21, %c0_22] : memref<8x2xf32, #tpu.memory_space<vmem>>, vector<8x1xf32>
    %cst_23 = arith.constant dense<0xFF800000> : vector<8xf32>
    %27 = vector.multi_reduction <maximumf>, %25, %cst_23 [1] : vector<8x8xf32> to vector<8xf32>
    %28 = vector.shape_cast %27 : vector<8xf32> to vector<8x1xf32>
    %29 = arith.maximumf %26, %28 : vector<8x1xf32>
    %30 = arith.subf %26, %29 : vector<8x1xf32>
    %31 = math.exp %30 : vector<8x1xf32>
    %32 = vector.broadcast %29 : vector<8x1xf32> to vector<8x8xf32>
    %33 = arith.subf %25, %32 : vector<8x8xf32>
    %34 = math.exp %33 : vector<8x8xf32>
    %c0_24 = arith.constant 0 : index
    %c0_25 = arith.constant 0 : index
    %35 = vector.load %arg15[%c0_24, %c0_25] : memref<8x2xf32, #tpu.memory_space<vmem>>, vector<8x1xf32>
    %36 = arith.mulf %31, %35 : vector<8x1xf32>
    %cst_26 = arith.constant dense<0.000000e+00> : vector<8xf32>
    %37 = vector.multi_reduction <add>, %34, %cst_26 [1] : vector<8x8xf32> to vector<8xf32>
    %38 = vector.shape_cast %37 : vector<8xf32> to vector<8x1xf32>
    %39 = arith.addf %36, %38 : vector<8x1xf32>
    %c0_27 = arith.constant 0 : index
    %c0_28 = arith.constant 0 : index
    %40 = vector.load %arg15[%c0_27, %c0_28] : memref<8x2xf32, #tpu.memory_space<vmem>>, vector<8x1xf32>
    tpu.vector_store %arg15[%c0_27, %c0_28], %39 {strides = array<i32>} : memref<8x2xf32, #tpu.memory_space<vmem>>, vector<8x1xf32>,
    %c0_29 = arith.constant 0 : index
    %c0_30 = arith.constant 0 : index
    %41 = vector.load %arg16[%c0_29, %c0_30] : memref<8x32xf32, #tpu.memory_space<vmem>>, vector<8x16xf32>
    %42 = vector.broadcast %31 : vector<8x1xf32> to vector<8x16xf32>
    %43 = arith.mulf %42, %41 : vector<8x16xf32>
    %cst_31 = arith.constant dense<0.000000e+00> : vector<8x16xf32>
    %44 = tpu.matmul %34, %24, %cst_31 {dimension_numbers = #tpu.dot_dimension_numbers<[1], [0], [0], [1], [0, 0, 1, 1], [], []>} : vector<8x8xf32>, vector<8x16xf32>, vector<8x16xf32> -> vector<8x16xf32>
    %45 = arith.addf %43, %44 : vector<8x16xf32>
    %c0_32 = arith.constant 0 : index
    %c0_33 = arith.constant 0 : index
    %46 = vector.load %arg16[%c0_32, %c0_33] : memref<8x32xf32, #tpu.memory_space<vmem>>, vector<8x16xf32>
    tpu.vector_store %arg16[%c0_32, %c0_33], %45 {strides = array<i32>} : memref<8x32xf32, #tpu.memory_space<vmem>>, vector<8x16xf32>,
    %c0_34 = arith.constant 0 : index
    %c0_35 = arith.constant 0 : index
    %47 = vector.load %arg14[%c0_34, %c0_35] : memref<8x2xf32, #tpu.memory_space<vmem>>, vector<8x1xf32>
    tpu.vector_store %arg14[%c0_34, %c0_35], %29 {strides = array<i32>} : memref<8x2xf32, #tpu.memory_space<vmem>>, vector<8x1xf32>,
    %48 = vector.extract_strided_slice %11 {offsets = [0, 16], sizes = [8, 16], strides = [1, 1]} : vector<8x32xf32> to vector<8x16xf32>
    %49 = vector.extract_strided_slice %16 {offsets = [0, 16], sizes = [8, 16], strides = [1, 1]} : vector<8x32xf32> to vector<8x16xf32>
    %50 = vector.extract_strided_slice %21 {offsets = [0, 16], sizes = [8, 16], strides = [1, 1]} : vector<8x32xf32> to vector<8x16xf32>
    %cst_36 = arith.constant dense<0.000000e+00> : vector<8x8xf32>
    %51 = tpu.matmul %48, %49, %cst_36 {dimension_numbers = #tpu.dot_dimension_numbers<[1], [1], [0], [0], [0, 0, 1, 0], [], []>} : vector<8x16xf32>, vector<8x16xf32>, vector<8x8xf32> -> vector<8x8xf32>
    %c0_37 = arith.constant 0 : index
    %c1 = arith.constant 1 : index
    %52 = vector.load %arg14[%c0_37, %c1] : memref<8x2xf32, #tpu.memory_space<vmem>>, vector<8x1xf32>
    %cst_38 = arith.constant dense<0xFF800000> : vector<8xf32>
    %53 = vector.multi_reduction <maximumf>, %51, %cst_38 [1] : vector<8x8xf32> to vector<8xf32>
    %54 = vector.shape_cast %53 : vector<8xf32> to vector<8x1xf32>
    %55 = arith.maximumf %52, %54 : vector<8x1xf32>
    %56 = arith.subf %52, %55 : vector<8x1xf32>
    %57 = math.exp %56 : vector<8x1xf32>
    %58 = vector.broadcast %55 : vector<8x1xf32> to vector<8x8xf32>
    %59 = arith.subf %51, %58 : vector<8x8xf32>
    %60 = math.exp %59 : vector<8x8xf32>
    %c0_39 = arith.constant 0 : index
    %c1_40 = arith.constant 1 : index
    %61 = vector.load %arg15[%c0_39, %c1_40] : memref<8x2xf32, #tpu.memory_space<vmem>>, vector<8x1xf32>
    %62 = arith.mulf %57, %61 : vector<8x1xf32>
    %cst_41 = arith.constant dense<0.000000e+00> : vector<8xf32>
    %63 = vector.multi_reduction <add>, %60, %cst_41 [1] : vector<8x8xf32> to vector<8xf32>
    %64 = vector.shape_cast %63 : vector<8xf32> to vector<8x1xf32>
    %65 = arith.addf %62, %64 : vector<8x1xf32>
    %c0_42 = arith.constant 0 : index
    %c1_43 = arith.constant 1 : index
    %66 = vector.load %arg15[%c0_42, %c1_43] : memref<8x2xf32, #tpu.memory_space<vmem>>, vector<8x1xf32>
    tpu.vector_store %arg15[%c0_42, %c1_43], %65 {strides = array<i32>} : memref<8x2xf32, #tpu.memory_space<vmem>>, vector<8x1xf32>,
    %c0_44 = arith.constant 0 : index
    %c16 = arith.constant 16 : index
    %67 = vector.load %arg16[%c0_44, %c16] : memref<8x32xf32, #tpu.memory_space<vmem>>, vector<8x16xf32>
    %68 = vector.broadcast %57 : vector<8x1xf32> to vector<8x16xf32>
    %69 = arith.mulf %68, %67 : vector<8x16xf32>
    %cst_45 = arith.constant dense<0.000000e+00> : vector<8x16xf32>
    %70 = tpu.matmul %60, %50, %cst_45 {dimension_numbers = #tpu.dot_dimension_numbers<[1], [0], [0], [1], [0, 0, 1, 1], [], []>} : vector<8x8xf32>, vector<8x16xf32>, vector<8x16xf32> -> vector<8x16xf32>
    %71 = arith.addf %69, %70 : vector<8x16xf32>
    %c0_46 = arith.constant 0 : index
    %c16_47 = arith.constant 16 : index
    %72 = vector.load %arg16[%c0_46, %c16_47] : memref<8x32xf32, #tpu.memory_space<vmem>>, vector<8x16xf32>
    tpu.vector_store %arg16[%c0_46, %c16_47], %71 {strides = array<i32>} : memref<8x32xf32, #tpu.memory_space<vmem>>, vector<8x16xf32>,
    %c0_48 = arith.constant 0 : index
    %c1_49 = arith.constant 1 : index
    %73 = vector.load %arg14[%c0_48, %c1_49] : memref<8x2xf32, #tpu.memory_space<vmem>>, vector<8x1xf32>
    tpu.vector_store %arg14[%c0_48, %c1_49], %55 {strides = array<i32>} : memref<8x2xf32, #tpu.memory_space<vmem>>, vector<8x1xf32>,
    %c0_i32_50 = arith.constant 0 : i32
    %74 = arith.cmpi eq, %arg2, %c0_i32_50 : i32
    %75 = arith.extui %74 : i1 to i32
    %c0_i32_51 = arith.constant 0 : i32
    %76 = arith.cmpi ne, %75, %c0_i32_51 : i32
    scf.if %76 {
      %c0_52 = arith.constant 0 : index
      %c0_53 = arith.constant 0 : index
      %77 = vector.load %arg15[%c0_52, %c0_53] : memref<8x2xf32, #tpu.memory_space<vmem>>, vector<8x1xf32>
      %78 = tpu.reciprocal %77 {approx = true} : vector<8x1xf32> -> vector<8x1xf32>
      %c0_54 = arith.constant 0 : index
      %c0_55 = arith.constant 0 : index
      %79 = vector.load %arg16[%c0_54, %c0_55] : memref<8x32xf32, #tpu.memory_space<vmem>>, vector<8x16xf32>
      %80 = vector.broadcast %78 : vector<8x1xf32> to vector<8x16xf32>
      %81 = arith.mulf %79, %80 : vector<8x16xf32>
      %c0_56 = arith.constant 0 : index
      %c0_57 = arith.constant 0 : index
      %82 = vector.load %arg16[%c0_56, %c0_57] : memref<8x32xf32, #tpu.memory_space<vmem>>, vector<8x16xf32>
      tpu.vector_store %arg16[%c0_56, %c0_57], %81 {strides = array<i32>} : memref<8x32xf32, #tpu.memory_space<vmem>>, vector<8x16xf32>,
      %c0_58 = arith.constant 0 : index
      %c1_59 = arith.constant 1 : index
      %83 = vector.load %arg15[%c0_58, %c1_59] : memref<8x2xf32, #tpu.memory_space<vmem>>, vector<8x1xf32>
      %84 = tpu.reciprocal %83 {approx = true} : vector<8x1xf32> -> vector<8x1xf32>
      %c0_60 = arith.constant 0 : index
      %c16_61 = arith.constant 16 : index
      %85 = vector.load %arg16[%c0_60, %c16_61] : memref<8x32xf32, #tpu.memory_space<vmem>>, vector<8x16xf32>
      %86 = vector.broadcast %84 : vector<8x1xf32> to vector<8x16xf32>
      %87 = arith.mulf %85, %86 : vector<8x16xf32>
      %c0_62 = arith.constant 0 : index
      %c16_63 = arith.constant 16 : index
      %88 = vector.load %arg16[%c0_62, %c16_63] : memref<8x32xf32, #tpu.memory_space<vmem>>, vector<8x16xf32>
      tpu.vector_store %arg16[%c0_62, %c16_63], %87 {strides = array<i32>} : memref<8x32xf32, #tpu.memory_space<vmem>>, vector<8x16xf32>,
      %c0_64 = arith.constant 0 : index
      %c0_65 = arith.constant 0 : index
      %89 = vector.load %arg16[%c0_64, %c0_65] : memref<8x32xf32, #tpu.memory_space<vmem>>, vector<8x32xf32>
      %c0_66 = arith.constant 0 : index
      %c0_67 = arith.constant 0 : index
      %90 = vector.load %arg11[%c0_66, %c0_67] : memref<32x16xf32, #tpu.memory_space<vmem>>, vector<32x16xf32>
      %cst_68 = arith.constant dense<0.000000e+00> : vector<8x16xf32>
      %91 = tpu.matmul %89, %90, %cst_68 {dimension_numbers = #tpu.dot_dimension_numbers<[1], [0], [0], [1], [0, 0, 1, 1], [], []>} : vector<8x32xf32>, vector<32x16xf32>, vector<8x16xf32> -> vector<8x16xf32>
      %c0_69 = arith.constant 0 : index
      %c0_70 = arith.constant 0 : index
      %92 = vector.load %arg12[%c0_69, %c0_70] : memref<1x16xf32, #tpu.memory_space<vmem>>, vector<1x16xf32>
      %93 = vector.broadcast %92 : vector<1x16xf32> to vector<8x16xf32>
      %94 = arith.addf %91, %93 : vector<8x16xf32>
      %c0_71 = arith.constant 0 : index
      %c0_72 = arith.constant 0 : index
      %c0_73 = arith.constant 0 : index
      %95 = vector.load %arg13[%c0_71, %c0_72, %c0_73] : memref<1x8x16xf32, #tpu.memory_space<vmem>>, vector<1x8x16xf32>
      %96 = vector.shape_cast %95 : vector<1x8x16xf32> to vector<8x16xf32>
      %97 = vector.shape_cast %94 : vector<8x16xf32> to vector<1x8x16xf32>
      tpu.vector_store %arg13[%c0_71, %c0_72, %c0_73], %97 {strides = array<i32>} : memref<1x8x16xf32, #tpu.memory_space<vmem>>, vector<1x8x16xf32>,
    } else {
    }
    return
  }
  func.func @transform_0(%arg0: i32, %arg1: i32, %arg2: i32) -> (i32, i32, i32) {
    %c0_i32 = arith.constant 0 : i32
    %c0_i32_0 = arith.constant 0 : i32
    return %arg0, %arg1, %c0_i32 : i32, i32, i32
  }
  func.func @transform_1(%arg0: i32, %arg1: i32, %arg2: i32) -> (i32, i32, i32) {
    %c0_i32 = arith.constant 0 : i32
    %c0_i32_0 = arith.constant 0 : i32
    return %arg0, %arg2, %c0_i32 : i32, i32, i32
  }
  func.func @transform_2(%arg0: i32, %arg1: i32, %arg2: i32) -> (i32, i32) {
    %c0_i32 = arith.constant 0 : i32
    %c0_i32_0 = arith.constant 0 : i32
    %c0_i32_1 = arith.constant 0 : i32
    return %c0_i32, %c0_i32_0 : i32, i32
  }
  func.func @transform_3(%arg0: i32, %arg1: i32, %arg2: i32) -> (i32, i32) {
    %c0_i32 = arith.constant 0 : i32
    %c0_i32_0 = arith.constant 0 : i32
    %c0_i32_1 = arith.constant 0 : i32
    return %c0_i32, %c0_i32_0 : i32, i32
  }
  func.func @transform_4(%arg0: i32, %arg1: i32, %arg2: i32) -> (i32, i32) {
    %c0_i32 = arith.constant 0 : i32
    %c0_i32_0 = arith.constant 0 : i32
    %c0_i32_1 = arith.constant 0 : i32
    return %c0_i32, %c0_i32_0 : i32, i32
  }
  func.func @transform_5(%arg0: i32, %arg1: i32, %arg2: i32) -> (i32, i32) {
    %c0_i32 = arith.constant 0 : i32
    %c0_i32_0 = arith.constant 0 : i32
    %c0_i32_1 = arith.constant 0 : i32
    return %c0_i32, %c0_i32_0 : i32, i32
  }
  func.func @transform_6(%arg0: i32, %arg1: i32, %arg2: i32) -> (i32, i32) {
    %c0_i32 = arith.constant 0 : i32
    %c0_i32_0 = arith.constant 0 : i32
    %c0_i32_1 = arith.constant 0 : i32
    return %c0_i32, %c0_i32_0 : i32, i32
  }
  func.func @transform_7(%arg0: i32, %arg1: i32, %arg2: i32) -> (i32, i32) {
    %c0_i32 = arith.constant 0 : i32
    %c0_i32_0 = arith.constant 0 : i32
    %c0_i32_1 = arith.constant 0 : i32
    return %c0_i32, %c0_i32_0 : i32, i32
  }
  func.func @transform_8(%arg0: i32, %arg1: i32, %arg2: i32) -> (i32, i32) {
    %c0_i32 = arith.constant 0 : i32
    %c0_i32_0 = arith.constant 0 : i32
    %c0_i32_1 = arith.constant 0 : i32
    return %c0_i32, %c0_i32_0 : i32, i32
  }
  func.func @transform_9(%arg0: i32, %arg1: i32, %arg2: i32) -> (i32, i32) {
    %c0_i32 = arith.constant 0 : i32
    %c0_i32_0 = arith.constant 0 : i32
    %c0_i32_1 = arith.constant 0 : i32
    return %c0_i32, %c0_i32_0 : i32, i32
  }
  func.func @transform_10(%arg0: i32, %arg1: i32, %arg2: i32) -> (i32, i32, i32) {
    %c0_i32 = arith.constant 0 : i32
    %c0_i32_0 = arith.constant 0 : i32
    return %arg0, %arg1, %c0_i32 : i32, i32, i32
  }
}

</mosaic_0001>

<bundles_post_ra>
// kernel: tpu_custom_call.1
= control target key start
LH: loop header
LB: loop body
LE: loop exit
PB: predicated region body
PF: predicated region fallthrough
CT: control target
= control target key end

     0   :  { %s2177_s0 = inlined_call_operand.hbm [shape: f32[2,8,16], index: 0, kind: input, shape index: {}]   ;;  %s2178_s1 = inlined_call_operand.hbm [shape: f32[2,8,32], index: 1, kind: input, shape index: {}]   ;;  %s2179_s2 = inlined_call_operand.hbm [shape: f32[16,32], index: 2, kind: input, shape index: {}]   ;;  %s2180_s3 = inlined_call_operand.vmem [shape: f32[1,32], index: 3, kind: input, shape index: {}]   ;;  %s2181_s4 = inlined_call_operand.vmem [shape: f32[32,32], index: 4, kind: input, shape index: {}]   ;;  %s2182_s5 = inlined_call_operand.vmem [shape: f32[1,32], index: 5, kind: input, shape index: {}]   ;;  %s2183_s6 = inlined_call_operand.vmem [shape: f32[32,32], index: 6, kind: input, shape index: {}]   ;;  %s2184_s7 = inlined_call_operand.vmem [shape: f32[1,32], index: 7, kind: input, shape index: {}]   ;;  %s2185_s8 = inlined_call_operand.vmem [shape: f32[32,16], index: 8, kind: input, shape index: {}]   ;;  %s2186_s9 = inlined_call_operand.vmem [shape: f32[1,16], index: 9, kind: input, shape index: {}]   ;;  %s2187_s10 = inlined_call_operand.hbm [shape: f32[2,8,16], index: 10, kind: output, shape index: {}]  }
   0x1   :  { %2198 = sst [smem:[#allocation22_spill]] %s2179_s2 }
   0x2   :  { %2199 = sst [smem:[#allocation23_spill]] %s2186_s9 }
   0x3   :  { %2200 = sst [smem:[#allocation24_spill]] %s2187_s10 }
   0x4   :  { %15 = vsyncpa [#allocation6], 0 }
   0x5   :  { %17 = vsyncpa [#allocation6 + $0x1], 0 }
   0x6   :  { %18 = vsyncpa [#allocation9], 0 }
   0x7   :  { %20 = vsyncpa [#allocation9 + $0x1], 0 }
   0x8   :  { %21 = vsyncpa [#allocation7], 0 }
   0x9   :  { %23 = vsyncpa [#allocation7 + $0x1], 0  ;;  %s1820_s13 = smov 0   ;;  %s1822_s14 = smov 0  }
   0xa   :  { %s1824_s15 = smov 0   ;;  %s1826_s16 = smov 0  }
   0xb   :  { %s1828_s17 = smov 0   ;;  %s1830_s18 = smov 0  }
   0xc LB: > { %2201 = sst [smem:[#allocation16_spill]] %s1729_s13  ;;  %s1851_s19 = sadd.s32 4294967295, %s1749_s18   ;;  %s1749_s18 = sphi %s1830_s18, %s29_s18   ;;  %s1745_s17 = sphi %s1828_s17, %s2230_s17   ;;  %s1741_s16 = sphi %s1826_s16, %s2229_s16   ;;  %s1737_s15 = sphi %s1824_s15, %s2228_s15   ;;  %s1733_s14 = sphi %s1822_s14, %s2232_s14   ;;  %s1729_s13 = sphi %s1820_s13, %s2231_s13  }
   0xd   : > { %2202 = sst [smem:[#allocation17_spill]] %s1737_s15  ;;  %s1332_s20 = sadd.s32 4294967294, %s1749_s18  }
   0xe   : > { %2203 = sst [smem:[#allocation18_spill]] %s1745_s17  ;;  %p70_p0 = scmp.ne.s32.totalorder %s1733_s14, %s1729_s13 }
   0xf   : > { %p2189_p1 = scmp.eq.s32.totalorder %s1851_s19, 0  ;;  %p298_p3 = scmp.eq.s32.totalorder %s1332_s20, 1 }
  0x10   : > { %p1333_p5 = scmp.ge.s32.totalorder %s1749_s18, 1  ;;  %p305_p7 = scmp.lt.s32.totalorder %s1749_s18, 3 }
  0x11   : > { %p1860_p4 = por %p2189_p1, %p70_p0  ;;  %p1865_p6 = por %p298_p3, %p70_p0 }
  0x12   : > { %p1870_p8 = pnand %p1333_p5, %p305_p7  ;;  %s1751_s24 = smov [#allocation10]  }
  0x13   : > { %s2204_s21 = scalar_select %p1860_p4, 1, 0 }
  0x14   : > { %s2205_s22 = scalar_select %p1865_p6, 1, 0 }
  0x15   : > { %s2207_s23 = scalar_select %p1870_p8, 1, 0 }
  0x16   : > { %2206 = sst [smem:[#allocation19_spill]] %s2205_s22  ;;  %s317_s25 = sshll.u32 %s1751_s24, 4  ;;  %s318_s25 = int_to_ptr.vmem [resolvable:$true] %s317_s25 }
  0x17   : > { %p1480_p9 = pneg %p1870_p8  ;;  %s48_s27 = sadd.s32 1, %s1745_s17 }
  0x18   : > { %s2209_s2 = sld [smem:[#allocation22_spill]] }
  0x19   : > { %p1879_p11 = pnand %p1480_p9, %p2189_p1 }
  0x1b   : > { %p1573_p13 = pneg %p1879_p11 }
  0x1e   : > { %s1571_s30 = scalar_lea.hbm %s2209_s2, 256 }
  0x1f   : > { %p1572_p12 = scmp.ne.s32.totalorder %s2209_s2, %s1571_s30  ;;  %p1578_p5 = scmp.lt.u32.totalorder %s1571_s30, %s2209_s2 }
  0x21   : > { %p1574_p0 = pnand %p1573_p13, %p1572_p12 }
  0x23   : > { %p1575_p3 = pneg %p1574_p0 }
  0x25   : > { %p1580_p7 = pnand %p1578_p5, %p1575_p3 }
  0x27   : > { %1583 = shalt.err (!%p1580_p7)
}
  0x28   : > { %s1584_s22 = scalar_lea.vmem %s318_s25, 256  ;;  %p1592_p2 = scmp.lt.s32.totalorder %s318_s25, %s318_s25 }
  0x29   : > { %p1585_p9 = scmp.ne.s32.totalorder %s318_s25, %s1584_s22  ;;  %p1593_p6 = scmp.lt.s32.totalorder %s1584_s22, %s1584_s22 }
  0x2b   : > { %p1587_p10 = pnand %p1585_p9, %p1573_p13  ;;  %p1594_p4 = por %p1593_p6, %p1592_p2 }
  0x2d   : > { %p1588_p1 = pneg %p1587_p10 }
  0x2f   : > { %p1595_p8 = pnand %p1594_p4, %p1588_p1 }
  0x31   : > { %1598 = shalt.err (!%p1595_p8)
}
  0x32   : > { %s1752_s28 = smov 128   ;;  %s1753_s29 = smov 8  }
  0x33   : > { %1483 = dma.hbm_to_vmem [thread:$0]  (!%p1879_p11), %s2209_s2, 256, %s318_s25, [#allocation9], %s1752_s28, %s1752_s28, %s1753_s29  }
  0x34   : > { %p50_p1 = scmp.ge.s32.totalorder %s48_s27, 2  ;;  %s57_s22 = sadd.s32 1, %s1737_s15 }
  0x35   : > { %p64_p2 = scmp.ne.s32.totalorder %s1737_s15, %s1733_s14  ;;  %p65_p4 = scmp.eq.s32.totalorder %s1749_s18, 0 }
  0x36   : > { %s2234_s27 = smov (%p50_p1, %s48_s27), 0  ;;  %p2212_p8 = scmp.eq.s32.totalorder %s1851_s19, 1 }
  0x37   : > { %2210 = sst [smem:[#allocation20_spill]] %s2234_s27  ;;  %p1906_p6 = por %p65_p4, %p64_p2 }
  0x38   : > { %p1912_p10 = por %p2212_p8, %p64_p2  ;;  %s52_s20 = ssub.s32 %s1745_s17, %s2234_s27 }
  0x39   : > { %p1496_p11 = scmp.lt.s32.totalorder %s1749_s18, 2  ;;  %p55_p12 = scmp.eq.s32.totalorder %s52_s20, 0 }
  0x3a   : > { %s2213_s26 = scalar_select %p1912_p10, 1, 0 }
  0x3b   : > { %s352_s25 = sand.u32 1, %s1737_s15   ;;  %s1337_s29 = sshll.u32 %s1745_s17, 7 }
  0x3c   : > { %s1920_s24 = sshll.u32 %s352_s25, 3  ;;  %s1929_s2 = scalar_lea.hbm %s2177_s0, %s1337_s29 }
  0x3d   : > { %s1923_s28 = scalar_select %p55_p12, %s1737_s15, %s57_s22  }
  0x3e   : > { %s356_s13 = scalar_lea.vmem [#allocation5], %s1920_s24  ;;  %p1936_p13 = pnand %p1496_p11, %p1906_p6 }
  0x3f   : > { %2214 = sst [smem:[#allocation21_spill]] %s1923_s28  ;;  %s364_s27 = sshll.u32 %s356_s13, 4  ;;  %s1932_s27 = int_to_ptr.vmem [resolvable:$true] %s364_s27 }
  0x40   : > { %s1943_s30 = scalar_lea.hbm %s2178_s1, %s1337_s29  ;;  %s371_s11 = sand.u32 1, %s1749_s18  }
  0x41   : > { %s353_s28 = scalar_lea.sflag [#allocation6], %s352_s25  ;;  %s1599_s15 = scalar_lea.hbm %s1929_s2, 128 }
  0x42   : > { %p1600_p0 = scmp.ne.s32.totalorder %s1929_s2, %s1599_s15  ;;  %p1601_p3 = pneg %p1936_p13 }
  0x43   : > { %s1604_s10 = scalar_lea.hbm %s2177_s0, 256  ;;  %p1605_p9 = scmp.lt.u32.totalorder %s1929_s2, %s2177_s0 }
  0x44   : > { %p1602_p5 = pnand %p1601_p3, %p1600_p0  ;;  %p1606_p1 = scmp.lt.u32.totalorder %s1604_s10, %s1599_s15 }
  0x45   : > { %p1608_p4 = scmp.lt.u32.totalorder %s1599_s15, %s1929_s2 }
  0x46   : > { %p1603_p7 = pneg %p1602_p5  ;;  %p1607_p2 = por %p1606_p1, %p1605_p9 }
  0x48   : > { %p1609_p6 = por %p1608_p4, %p1607_p2 }
  0x4a   : > { %p1610_p8 = pnand %p1609_p6, %p1603_p7 }
  0x4c   : > { %1613 = shalt.err (!%p1610_p8)
}
  0x4d   : > { %s1614_s25 = scalar_lea.vmem %s1932_s27, 128  ;;  %s1754_s29 = smov [#allocation5]  }
  0x4e   : > { %p1615_p11 = scmp.ne.s32.totalorder %s1932_s27, %s1614_s25  ;;  %s1619_s22 = sshll.u32 %s1754_s29, 4  ;;  %s1620_s22 = int_to_ptr.vmem [resolvable:$false] %s1619_s22 }
  0x4f   : > { %s1621_s9 = scalar_lea.vmem %s1620_s22, 256  ;;  %p1622_p5 = scmp.lt.s32.totalorder %s1932_s27, %s1620_s22 }
  0x50   : > { %p1617_p12 = pnand %p1615_p11, %p1601_p3  ;;  %p1623_p9 = scmp.lt.s32.totalorder %s1621_s9, %s1614_s25 }
  0x52   : > { %p1618_p0 = pneg %p1617_p12  ;;  %p1624_p1 = por %p1623_p9, %p1622_p5 }
  0x54   : > { %p1625_p2 = pnand %p1624_p1, %p1618_p0 }
  0x56   : > { %1628 = shalt.err (!%p1625_p2)
}
  0x57   : > { %1487 = dma.hbm_to_vmem [thread:$0]  (!%p1936_p13), %s1929_s2, 128, %s1932_s27, %s353_s28  }
  0x58   : > { %s375_s10 = scalar_lea.vmem [#allocation8], %s1920_s24  ;;  %s372_s13 = scalar_lea.sflag [#allocation9], %s371_s11 }
  0x59   : > { %s383_s15 = sshll.u32 %s375_s10, 4  ;;  %s1629_s12 = scalar_lea.hbm %s1943_s30, 128  ;;  %s384_s15 = int_to_ptr.vmem [resolvable:$true] %s383_s15 }
  0x5a   : > { %p1630_p7 = scmp.ne.s32.totalorder %s1943_s30, %s1629_s12  ;;  %s1634_s29 = scalar_lea.hbm %s2178_s1, 256 }
  0x5b   : > { %p1635_p8 = scmp.lt.u32.totalorder %s1943_s30, %s2178_s1  ;;  %p1636_p11 = scmp.lt.u32.totalorder %s1634_s29, %s1629_s12 }
  0x5c   : > { %p1632_p4 = pnand %p1630_p7, %p1601_p3  ;;  %p1638_p0 = scmp.lt.u32.totalorder %s1629_s12, %s1943_s30 }
  0x5d   : > { %p1637_p12 = por %p1636_p11, %p1635_p8 }
  0x5e   : > { %p1633_p6 = pneg %p1632_p4 }
  0x5f   : > { %p1639_p5 = por %p1638_p0, %p1637_p12 }
  0x61   : > { %p1640_p9 = pnand %p1639_p5, %p1633_p6 }
  0x63   : > { %1643 = shalt.err (!%p1640_p9)
}
  0x64   : > { %s1644_s2 = scalar_lea.vmem %s384_s15, 128  ;;  %s1755_s27 = smov [#allocation8]  }
  0x65   : > { %p1645_p1 = scmp.ne.s32.totalorder %s384_s15, %s1644_s2  ;;  %s1649_s24 = sshll.u32 %s1755_s27, 4  ;;  %s1650_s24 = int_to_ptr.vmem [resolvable:$false] %s1649_s24 }
  0x66   : > { %s1651_s28 = scalar_lea.vmem %s1650_s24, 256  ;;  %p1652_p4 = scmp.lt.s32.totalorder %s384_s15, %s1650_s24 }
  0x67   : > { %p1647_p2 = pnand %p1645_p1, %p1601_p3  ;;  %p1653_p10 = scmp.lt.s32.totalorder %s1651_s28, %s1644_s2 }
  0x69   : > { %p1648_p7 = pneg %p1647_p2  ;;  %p1654_p8 = por %p1653_p10, %p1652_p4 }
  0x6b   : > { %p1655_p11 = pnand %p1654_p8, %p1648_p7 }
  0x6d   : > { %1658 = shalt.err (!%p1655_p11)
}
  0x6e   : > { %1490 = dma.hbm_to_vmem [thread:$0]  (!%p1936_p13), %s1943_s30, 128, %s384_s15, %s372_s13  }
  0x6f   : > { %p2216_p6 = scmp.ne.s32.totalorder %s2207_s23, 0 }
  0x70   : > { %s1996_s11 = sand.u32 (!%p2216_p6), 1, %s1733_s14   ;;  %p2217_p10 = scmp.ne.s32.totalorder (!%p2216_p6), %s2204_s21, 0 }
  0x71   : > { %392 = sbr.rel (%p2216_p6) target bundleno = 1562 (0x61a), region = 60  ;;  %s1999_s10 = sshll.u32 (!%p2216_p6), %s1996_s11, 3 }
  0x72   : > { %s395_s12 = scalar_lea.sflag (!%p2216_p6), [#allocation6], %s1996_s11  ;;  %s398_s17 = scalar_lea.vmem (!%p2216_p6), [#allocation5], %s1999_s10 }
  0x78   : > { %1712 = dma.done.wait (%p2217_p10), %s395_s12, 128  }
  0x79   : > { %1714 = vsyncadd (%p2217_p10), %s395_s12, 4294967168  ;;  %s403_s23 = sand.u32 1, %s1851_s19   ;;  %s407_s30 = scalar_lea.vmem [#allocation8], %s1999_s10 }
  0x7a   : > { %s404_s20 = scalar_lea.sflag [#allocation9], %s403_s23 }
  0x7b   : > { %1716 = dma.done.wait (%p2217_p10), %s404_s20, 128  }
  0x7c   : > { %1718 = vsyncadd (%p2217_p10), %s404_s20, 4294967168  ;;  %p2218_p13 = scmp.eq.s32.totalorder %s1851_s19, 0 }
  0x7e   : > { %1720 = dma.done.wait (%p2218_p13), [#allocation9], 256   ;;  %p2219_p3 = pmov %p2218_p13 }
  0x7f   : > { %vm460_vm0 = vcmask 261120   ;;  %v1756_v0 = vmov 0.0|0.0   ;;  %v1757_v1 = vmov 0.0   ;;  %vm1758_vm1 = vmmov 0   ;;  %v547_v2 = vld [vmem:[%s2181_s4] sm:$0xff]  ;;  %v548_v3 = vld [vmem:[%s2181_s4 + $0x8] sm:$0xff] }
  0x80   : > { %1722 = vsyncadd (%p2219_p3), [#allocation9], 4294967040  ;;  %1452 = vmatprep.subr.bf16.mxu1 %v1756_v0  ;;  %1449 = vmatprep.subr.bf16.mxu0 %v1756_v0  ;;  %461 = vst.msk [vmem:[#allocation4] sm:$0xff] %vm460_vm0, %v1757_v1  ;;  %v549_v4 = vld [vmem:[%s2181_s4 + $0x10] sm:$0xff]  ;;  %v1453_v5 = vpack.c.bf16 %v548_v3, %v547_v2  ;;  %v550_v6 = vld [vmem:[%s2181_s4 + $0x18] sm:$0xff]  ;;  %vm473_vm2 = vcmask 130048  }
  0x81   : > { %1404 = vmatprep.mubr.msk.f32.mxu1 %vm1758_vm1, %v1757_v1  ;;  %1393 = vmatprep.mubr.msk.f32.mxu0 %vm1758_vm1, %v1757_v1  ;;  %v464_v7 = vld [vmem:[#allocation10] sm:$0xff]  ;;  %v465_v8 = vld [vmem:[#allocation10 + $0x8] sm:$0xff]  ;;  %v1456_v10 = vpack.c.bf16 %v550_v6, %v549_v4  ;;  %v463_v12 = vld [vmem:[%s407_s30] sm:$0xff]  ;;  %s1759_s12 = smov 112   ;;  %vm457_vm3 = vcmask 15360   ;;  %v1760_v29 = vmov -inf  }
  0x82   : > { %v1450_v9 = vpack.c.bf16 %v465_v8, %v464_v7  ;;  %1454 = vmatpush3.bf16.msra.mxu1 %v1453_v5  ;;  %v462_v11 = vld [vmem:[%s398_s17] sm:$0xff]  ;;  %v633_v22 = vld [vmem:[%s2183_s6 + $0x8] sm:$0xff]  ;;  %v634_v23 = vld [vmem:[%s2183_s6 + $0x10] sm:$0xff]  ;;  %458 = vst.msk [vmem:[#allocation2] sm:$0xff] %vm457_vm3, %v1760_v29  ;;  %vm790_vm4 = vcmask 64512   ;;  %v1761_v33 = vmov 0  }
  0x83   : > { %1455 = vmatprep.subr.bf16.mxu1 %v1756_v0  ;;  %v1347_v14 = vld [vmem:[%s2182_s5] ss:$0 sm:$0xff]  ;;  %v635_v25 = vld [vmem:[%s2183_s6 + $0x18] sm:$0xff]  ;;  %459 = vst.msk [vmem:[#allocation3] sm:$0xff] %vm457_vm3, %v1757_v1  ;;  %1558 = vset.pattern.permute.xlu0 %v1761_v33  ;;  %v1762_v41 = vmov 1   ;;  %vm812_vm5 = vcmask 7168  }
  0x84   : > { %1451 = vmatpush3.bf16.msra.mxu0 %v1450_v9  ;;  %v1345_v16 = vld [vmem:[%s2180_s3] ss:$0 sm:$0xff]  ;;  %v1462_v26 = vpack.c.bf16 %v635_v25, %v634_v23  ;;  %1559 = vset.pattern.permute.xlu1 %v1762_v41  ;;  %vm997_vm6 = vcmask 15368   ;;  %s1763_s22 = smov 16   ;;  %v1117_v23 = vld [vmem:[%s2185_s8 + $0x10] sm:$0xff]  ;;  %vm1088_vm7 = vcmask 261248  }
  0x85   : > { %1458 = vmatprep.subr.bf16.mxu0 %v1756_v0  ;;  %v632_v21 = vld [vmem:[%s2183_s6] sm:$0xff]  ;;  %s2220_s19 = sld [smem:[#allocation23_spill]]  ;;  %s1360_s21 = sshll.u32 %s1741_s16, 7 }
  0x86   : > { %1457 = vmatpush3.bf16.msra.mxu1 %v1456_v10  ;;  %v1459_v24 = vpack.c.bf16 %v633_v22, %v632_v21  ;;  %v1349_v34 = vld [vmem:[%s2184_s7] ss:$0 sm:$0xff]  ;;  %v1116_v21 = vld [vmem:[%s2185_s8 + $0x8] sm:$0xff]  ;;  %s452_s15 = scalar_lea.vmem [#allocation11], %s1999_s10  ;;  %s1201_s2 = scalar_lea.sflag [#allocation7], %s1996_s11 }
  0x87   : > { %1394 = vmatmul.mubr.msk.f32.vlgmr.msra.gmra.mrb[0].mxu0 %vm473_vm2, %v462_v11  ;;  %1418 = vmatprep.subr.mxu1 %v1757_v1  ;;  %v814_v6 = vld [vmem:[#allocation4] sm:$0xff]  ;;  %s1215_s13 = sshll.u32 %s452_s15, 4  ;;  %p2222_p0 = scmp.ne.s32.totalorder %s2213_s26, 0  ;;  %s2129_s13 = int_to_ptr.vmem [resolvable:$true] %s1215_s13 }
  0x88   : > { %1415 = vmatprep.mubr.msk.f32.mxu0 %vm1758_vm1, %v1757_v1  ;;  %1460 = vmatpush3.bf16.msra.mxu0 %v1459_v24  ;;  %v1118_v24 = vld [vmem:[%s2185_s8 + $0x18] sm:$0xff]  ;;  %s1659_s27 = scalar_lea.vmem %s2129_s13, 128  ;;  %s1764_s16 = smov [#allocation11]  }
  0x89   : > { %1405 = vmatmul.mubr.msk.f32.vlgmr.msra.gmra.mrb[0].mxu1 %vm460_vm0, %v463_v12  ;;  %1461 = vmatprep.subr.bf16.mxu0 %v1756_v0  ;;  %v789_v42 = vld [vmem:[#allocation2] sm:$0xff]  ;;  %v1468_v25 = vpack.c.bf16 %v1118_v24, %v1117_v23  ;;  %p1660_p12 = scmp.ne.s32.totalorder %s2129_s13, %s1659_s27  ;;  %s1663_s10 = sshll.u32 %s1764_s16, 4  ;;  %s1664_s10 = int_to_ptr.vmem [resolvable:$false] %s1663_s10 }
  0x8a   : > { %1420 = vmatprep.mubr.msk.f32.mxu1 %vm1758_vm1, %v1757_v1  ;;  %v806_v3 = vld [vmem:[#allocation3] sm:$0xff]  ;;  %s1665_s24 = scalar_lea.vmem %s1664_s10, 256  ;;  %p1666_p1 = scmp.lt.s32.totalorder %s2129_s13, %s1664_s10 }
  0x8b   : > { %p1661_p5 = pnand %p1660_p12, %p2222_p0  ;;  %p1667_p2 = scmp.lt.s32.totalorder %s1665_s24, %s1659_s27 }
  0x8c   : > { %1463 = vmatpush3.bf16.msra.mxu0 %v1462_v26 }
  0x8d   : > { %1423 = vmatprep.subr.mxu0 %v1757_v1  ;;  %p1662_p9 = pneg %p1661_p5  ;;  %p1668_p7 = por %p1667_p2, %p1666_p1 }
  0x8f   : > { %1416 = vmatmul.mubr.msk.f32.vlgmr.msra.gmra.mrb[2].mxu0 %vm460_vm0, %v463_v12  ;;  %p1669_p4 = pnand %p1668_p7, %p1662_p9 }
  0x90   : > { %1425 = vmatprep.mubr.msk.f32.mxu0 %vm1758_vm1, %v1757_v1 }
 0x15a   : > { %v543_v13 = vpop.f32.mrb[0].mxu0 }
 0x15b   : > { %v1395_v15 = vpop.f32.mrb[1].mxu0  ;;  %v544_v20 = vadd.f32 %v1345_v16, %v543_v13 }
 0x15c   : > { %v628_v17 = vpop.f32.mrb[0].mxu1 }
 0x15d   : > { %v629_v18 = vadd.f32 %v1347_v14, %v628_v17  ;;  %v1406_v19 = vpop.f32.mrb[1].mxu1 }
 0x15f   : > { %899 = vrot.lane.b32.xlu0 %v629_v18, %s1759_s12  ;;  %1419 = vmatpush3.xpose.msk.msra.mxu1 %vm473_vm2, %v629_v18 }
 0x160   : > { %1428 = vmatprep.subr.mxu1 %v1757_v1 }
 0x162   : > { %1421 = vmatmul.mubr.msk.f32.vlgmr.msra.gmra.mrb[2].mxu1 %vm473_vm2, %v544_v20  ;;  %v709_v35 = vpop.f32.mrb[2].mxu0 }
 0x163   : > { %897 = vrot.lane.b32.xlu0 %v544_v20, %s1759_s12  ;;  %1430 = vmatprep.mubr.msk.f32.mxu1 %vm1758_vm1, %v1757_v1  ;;  %v710_v36 = vadd.f32 %v1349_v34, %v709_v35  ;;  %v1417_v37 = vpop.f32.mrb[3].mxu0  ;;  %v1115_v20 = vld [vmem:[%s2185_s8] sm:$0xff] }
 0x164   : > { %v1465_v22 = vpack.c.bf16 %v1116_v21, %v1115_v20  ;;  %v1357_v37 = vld [vmem:[%s2220_s19] ss:$0 sm:$0xff] }
 0x165   : > { %1424 = vmatpush3.msra.mxu0 %v710_v36 }
 0x166   : > { %1433 = vmatprep.subr.mxu0 %v1757_v1 }
 0x1d1   : > { %v900_v27 = vpop.permute.xlu0 %899 }
 0x1d2   : > { %1429 = vmatpush3.xpose.msk.msra.mxu1 %vm473_vm2, %v900_v27 }
 0x1d3   : > { %1464 = vmatprep.subr.bf16.mxu1 %v1756_v0 }
 0x1d5   : > { %v898_v28 = vpop.permute.xlu0 %897 }
 0x1d6   : > { %1431 = vmatmul.mubr.msk.f32.vlgmr.msra.gmra.mrb[4].mxu1 %vm473_vm2, %v898_v28 }
 0x1d7   : > { %1446 = vmatprep.mubr.msk.f32.mxu1 %vm1758_vm1, %v1757_v1  ;;  %1466 = vmatpush3.bf16.msra.mxu1 %v1465_v22 }
 0x1d8   : > { %1467 = vmatprep.subr.bf16.mxu1 %v1756_v0 }
 0x1db   : > { %1469 = vmatpush3.bf16.msra.mxu1 %v1468_v25 }
 0x235   : > { %v785_v30 = vpop.f32.mrb[2].mxu1 }
 0x236   : > { %v1422_v31 = vpop.f32.mrb[3].mxu1  ;;  %v791_v32 = vsel %vm790_vm4, %v785_v30, -inf }
 0x237   : > { %792 = vmax.xlane.f32.xlu1 %v791_v32 }
 0x2a9   : > { %v971_v38 = vpop.f32.mrb[4].mxu1 }
 0x2aa   : > { %v1432_v39 = vpop.f32.mrb[5].mxu1  ;;  %v976_v40 = vsel %vm790_vm4, %v971_v38, -inf }
 0x2ab   : > { %977 = vmax.xlane.f32.xlu1 %v976_v40 }
 0x2c4   : > { %v793_v43 = vpop.xlane.xlu1 %792 }
 0x2c5   : > { %v794_v44 = vmax.f32 %v789_v42, %v793_v43 }
 0x2c7   : > { %v795_v45 = vsub.f32 %v789_v42, %v794_v44  ;;  %896 = vst.msk [vmem:[#allocation2] sm:$0xff] %vm812_vm5, %v794_v44  ;;  %800 = vperm.xlu0 %1558, %v794_v44  }
 0x2c9   : > { %v796_v56 = vmul.f32 1.442695, %v795_v45 }
 0x2cb   : > { %1007 = vrot.lane.b32.xlu0 %v710_v36, %s1759_s12 }
 0x2ce   : > { %v975_v47 = vld [vmem:[#allocation2] sm:$0xff] }
 0x338   : > { %v978_v46 = vpop.xlane.xlu1 %977 }
 0x339   : > { %v979_v48 = vmax.f32 %v975_v47, %v978_v46 }
 0x33b   : > { %v980_v49 = vsub.f32 %v975_v47, %v979_v48  ;;  %1090 = vst.msk [vmem:[#allocation2] sm:$0xff] %vm997_vm6, %v979_v48  ;;  %985 = vperm.xlu1 %1559, %v979_v48  }
 0x33d   : > { %v981_v63 = vmul.f32 1.442695, %v980_v49 }
 0x346   : > { %v801_v50 = vpop.permute.xlu0 %800 }
 0x347   : > { %v803_v51 = vsub.f32 %v785_v30, %v801_v50 }
 0x349   : > { %v804_v52 = vmul.f32 1.442695, %v803_v51 }
 0x34a   : > { %v1008_v53 = vpop.permute.xlu0 %1007 }
 0x34b   : > { %1561 = vpow2.f32 %v804_v52 }
 0x34c   : > { %1563 = vpow2.f32 %v796_v56 }
 0x355   : > { %v1562_v54 = vpop.eup %1561 }
 0x356   : > { %1426 = vmatmul.mubr.msk.f32.vlgmr.msra.gmra.mrb[4].mxu0 %vm790_vm4, %v1562_v54  ;;  %v808_v55 = vsel %vm790_vm4, %v1562_v54, 0.0  ;;  %v1564_v57 = vpop.eup %1563 }
 0x357   : > { %809 = vadd.xlane.f32.xlu0 %v808_v55  ;;  %1434 = vmatpush3.msra.mxu0 %v1008_v53 }
 0x358   : > { %1435 = vmatprep.mubr.msk.f32.mxu0 %vm1758_vm1, %v1757_v1  ;;  %v807_v1 = vmul.f32 %v1564_v57, %v806_v3 }
 0x36d   : > { %817 = vperm.xlu0 %1558, %v1564_v57  }
 0x3ba   : > { %v986_v58 = vpop.permute.xlu1 %985 }
 0x3bb   : > { %v988_v59 = vsub.f32 %v971_v38, %v986_v58 }
 0x3bd   : > { %v989_v60 = vmul.f32 1.442695, %v988_v59 }
 0x3bf   : > { %1565 = vpow2.f32 %v989_v60 }
 0x3c0   : > { %1567 = vpow2.f32 %v981_v63 }
 0x3c9   : > { %v1566_v61 = vpop.eup %1565 }
 0x3ca   : > { %1436 = vmatmul.mubr.msk.f32.vlgmr.msra.gmra.mrb[6].mxu0 %vm790_vm4, %v1566_v61  ;;  %v993_v62 = vsel %vm790_vm4, %v1566_v61, 0.0  ;;  %v1568_v2 = vpop.eup %1567 }
 0x3cb   : > { %994 = vadd.xlane.f32.xlu1 %v993_v62 }
 0x3dc   : > { %1002 = vperm.xlu1 %1559, %v1568_v2  }
 0x3e4   : > { %v810_v4 = vpop.xlane.xlu0 %809 }
 0x3e5   : > { %v811_v5 = vadd.f32 %v810_v4, %v807_v1 }
 0x3e7   : > { %813 = vst.msk [vmem:[#allocation3] sm:$0xff] %vm812_vm5, %v811_v5 }
 0x3ec   : > { %v818_v7 = vpop.permute.xlu0 %817 }
 0x3ed   : > { %v820_v8 = vmul.f32 %v818_v7, %v814_v6 }
 0x3ee   : > { %v991_v12 = vld [vmem:[#allocation3] sm:$0xff] }
 0x3ef   : > { %v992_v13 = vmul.f32 %v1568_v2, %v991_v12 }
 0x429   : > { %v890_v9 = vpop.f32.mrb[4].mxu0 }
 0x42a   : > { %v894_v10 = vadd.f32 %v890_v9, %v820_v8  ;;  %v1427_v11 = vpop.f32.mrb[5].mxu0 }
 0x42c   : > { %895 = vst.msk [vmem:[#allocation4] sm:$0xff] %vm473_vm2, %v894_v10 }
 0x433   : > { %v999_v27 = vld [vmem:[#allocation4] sm:$0xff] }
 0x458   : > { %v995_v14 = vpop.xlane.xlu1 %994 }
 0x459   : > { %v996_v15 = vadd.f32 %v995_v14, %v992_v13 }
 0x45b   : > { %998 = vst.msk [vmem:[#allocation3] sm:$0xff] %vm997_vm6, %v996_v15 }
 0x45c   : > { %v1003_v26 = vpop.permute.xlu1 %1002 }
 0x45d   : > { %v1005_v28 = vmul.f32 %v1003_v26, %v999_v27 }
 0x462   : > { %v1104_v16 = vld [vmem:[#allocation3] sm:$0xff] }
 0x463   : > { %1569 = vrcp.f32 %v1104_v16 }
 0x46d   : > { %v1570_v17 = vpop.eup %1569 }
 0x46e   : > { %1109 = vperm.xlu1 %1559, %v1570_v17  }
 0x49d   : > { %v1079_v18 = vpop.f32.mrb[6].mxu0 }
 0x49e   : > { %v1437_v19 = vpop.f32.mrb[7].mxu0  ;;  %1084 = vrot.lane.b32.xlu0 %v1079_v18, %s1763_s22  ;;  %s2221_s22 = sld [smem:[#allocation24_spill]] }
 0x4a2   : > { %1099 = vperm.xlu0 %1558, %v1570_v17  }
 0x4a4   : > { %s2127_s9 = scalar_lea.hbm %s2221_s22, %s1360_s21 }
 0x4a6   : > { %1560 = vset.pattern.permute.xlu0 %v1762_v41 }
 0x4ed   : > { %v1110_v34 = vpop.permute.xlu1 %1109 }
 0x510   : > { %v1085_v29 = vpop.permute.xlu0 %1084 }
 0x511   : > { %v1087_v30 = vadd.f32 %v1085_v29, %v1005_v28 }
 0x513   : > { %1089 = vst.msk [vmem:[#allocation4] sm:$0xff] %vm1088_vm7, %v1087_v30 }
 0x51a   : > { %v1096_v31 = vld [vmem:[#allocation4] sm:$0xff] }
 0x521   : > { %v1100_v32 = vpop.permute.xlu0 %1099 }
 0x522   : > { %v1102_v33 = vmul.f32 %v1100_v32, %v1096_v31 }
 0x524   : > { %1103 = vst.msk [vmem:[#allocation4] sm:$0xff] %vm473_vm2, %v1102_v33 }
 0x52b   : > { %v1106_v35 = vld [vmem:[#allocation4] sm:$0xff] }
 0x52c   : > { %v1112_v36 = vmul.f32 %v1110_v34, %v1106_v35 }
 0x52e   : > { %1113 = vst.msk [vmem:[#allocation4] sm:$0xff] %vm1088_vm7, %v1112_v36 }
 0x535   : > { %v1114_v0 = vld [vmem:[#allocation4] sm:$0xff] }
 0x536   : > { %1447 = vmatmul.mubr.msk.f32.vlgmr.msra.gmra.mrb[6].mxu1 %vm460_vm0, %v1114_v0 }
 0x609   : > { %v1195_v38 = vpop.f32.mrb[6].mxu1 }
 0x60a   : > { %v1196_v39 = vadd.f32 %v1357_v37, %v1195_v38  ;;  %v1448_v40 = vpop.f32.mrb[7].mxu1 }
 0x60c   : > { %1199 = vst.msk [vmem:[%s452_s15] sm:$0xff] %vm473_vm2, %v1196_v39 }
 0x60d   : > { %1672 = shalt.err (!%p1669_p4)
}
 0x60e   : > { %s1673_s11 = scalar_lea.hbm %s2127_s9, 128  ;;  %s1677_s17 = scalar_lea.hbm %s2221_s22, 256 }
 0x60f   : > { %p1674_p8 = scmp.ne.s32.totalorder %s2127_s9, %s1673_s11  ;;  %p1678_p10 = scmp.lt.u32.totalorder %s2127_s9, %s2221_s22 }
 0x610   : > { %p1679_p13 = scmp.lt.u32.totalorder %s1677_s17, %s1673_s11  ;;  %p1681_p12 = scmp.lt.u32.totalorder %s1673_s11, %s2127_s9 }
 0x611   : > { %p1675_p11 = pnand %p1674_p8, %p2222_p0 }
 0x612   : > { %p1680_p3 = por %p1679_p13, %p1678_p10 }
 0x613   : > { %p1676_p6 = pneg %p1675_p11 }
 0x614   : > { %p1682_p5 = por %p1681_p12, %p1680_p3 }
 0x616   : > { %p1683_p9 = pnand %p1682_p5, %p1676_p6 }
 0x618   : > { %1686 = shalt.err (!%p1683_p9)
}
 0x619   : > { %1478 = dma.vmem_to_hbm [thread:$0]  (%p2222_p0), %s2129_s13, 128, %s2127_s9, %s1201_s2  }
 0x61a PF: > { %s2223_s30 = sld [smem:[#allocation16_spill]]  ;;  %s2224_s19 = sld [smem:[#allocation19_spill]] }
 0x61b   : > { %p2226_p2 = scmp.ge.s32.totalorder %s1749_s18, 2 }
 0x620   : > { %s1227_s21 = sand.u32 1, %s2223_s30   ;;  %p2225_p1 = scmp.ne.s32.totalorder %s2224_s19, 0 }
 0x621   : > { %s1228_s15 = scalar_lea.sflag [#allocation7], %s1227_s21 }
 0x622   : > { %p1492_p7 = pnand %p2226_p2, %p2225_p1 }
 0x624   : > { %1724 = dma.done.wait (!%p1492_p7), %s1228_s15, 128  }
 0x625   : > { %1726 = vsyncadd (!%p1492_p7), %s1228_s15, 4294967168  ;;  %s29_s18 = sadd.s32 1, %s1749_s18   ;;  %s2227_s25 = sld [smem:[#allocation17_spill]] }
 0x626   : > { %p26_p4 = scmp.ge.s32.totalorder %s29_s18, 4   ;;  %s2228_s15 = sld [smem:[#allocation21_spill]] }
 0x627   : > { %s2229_s16 = sld [smem:[#allocation18_spill]]  ;;  %s2230_s17 = sld [smem:[#allocation20_spill]] }
 0x628   : > { %s2231_s13 = smov %s1733_s14  ;;  %28 = sbr.rel (!%p26_p4) target bundleno = 12 (0xc), region = 130 }
 0x62b   : > { %s2232_s14 = smov %s2227_s25 }
 0x62f   :  { %1233 = vsyncpa [#allocation6], 1 }
 0x630   :  { %1235 = vsyncpa [#allocation6 + $0x1], 1 }
 0x631   :  { %1236 = vsyncpa [#allocation9], 1 }
 0x632   :  { %1238 = vsyncpa [#allocation9 + $0x1], 1 }
 0x633   :  { %1239 = vsyncpa [#allocation7], 1 }
 0x634   :  { %1241 = vsyncpa [#allocation7 + $0x1], 1 }

</bundles_post_ra>
